<compile_context>
chip_gen: v7x
topology: tpu7x:2x2x1
jax: 0.10.0
libtpu: 0.0.40
codegen_flags: <defaults>
</compile_context>

<pallas_src>
import jax
import jax.numpy as jnp
from jax.experimental import pallas as pl
from jax.experimental.pallas import tpu as pltpu


def bilinear_matrix(out_size: int, in_size: int) -> jnp.ndarray:
    """M (out_size, in_size) s.t. y = M @ x matches torch 1-D bilinear resize
    with align_corners=True."""
    out_idx = jnp.arange(out_size, dtype=jnp.float32)
    if out_size == 1:
        src = jnp.zeros((1,), jnp.float32)
    else:
        src = out_idx * (in_size - 1) / (out_size - 1)
    lo = jnp.clip(jnp.floor(src).astype(jnp.int32), 0, in_size - 1)
    hi = jnp.clip(lo + 1, 0, in_size - 1)
    w_hi = src - lo.astype(jnp.float32)
    w_lo = 1.0 - w_hi
    m = jnp.zeros((out_size, in_size), jnp.float32)
    m = m.at[jnp.arange(out_size), lo].add(w_lo)
    m = m.at[jnp.arange(out_size), hi].add(w_hi)
    return m


def up_kernel(u_ref, d_ref, kT_ref, wd_ref, w2_ref, be_ref, o_ref):
    # u:  (Nb, C_in, H*W)      low-res input, lane-dense last axis
    # d:  (Nb, C_d, 2H*2W)     skip connection, lane-dense last axis (mult of 128)
    # kT: (H*W, 2H*2W)         bilinear-x2 upsample as a single matrix (kron^T)
    # wd: (C_out, C_d)         W[:, :C_d]
    # w2: (C_out, C_in)        W[:, C_d:] @ W     (folded shared conv)
    # be: (C_out, 1)           W[:, C_d:] @ b + b (folded bias)
    u = u_ref[...]
    d = d_ref[...]
    kT = kT_ref[...]
    w_d = wd_ref[...]
    w2 = w2_ref[...]
    b_eff = be_ref[...]

    # Folded conv, commuted ahead of the upsample (both linear, exact identity):
    v = jnp.einsum('oc,ncs->nos', w2, u,
                   preferred_element_type=jnp.float32)          # (Nb, C_out, H*W)
    up = jnp.einsum('nos,st->not', v, kT,
                    preferred_element_type=jnp.float32)         # (Nb, C_out, 2H*2W)
    skip = jnp.einsum('oc,ncs->nos', w_d, d,
                      preferred_element_type=jnp.float32)       # (Nb, C_out, 2H*2W)

    o_ref[...] = (skip + up + b_eff[None, :, :]).astype(o_ref.dtype)


def up_forward(u, d, w, b, *, batch_block=None):
    N, C_in, H, W = u.shape
    _, C_d, H2, W2 = d.shape
    C_out = w.shape[0]
    assert C_d + C_out == C_in, "channel bookkeeping of the Up module"
    assert H2 == 2 * H and W2 == 2 * W

    HW, HW2 = H * W, H2 * W2

    # --- one-time host/XLA-side precomputation (tiny) ---
    ah = bilinear_matrix(H2, H)                       # (2H, H)
    aw = bilinear_matrix(W2, W)                       # (2W, W)
    kT = jnp.kron(ah, aw).T                           # (H*W, 2H*2W)
    w_d = w[:, :C_d]                                  # (C_out, C_d)
    w2 = w[:, C_d:] @ w                               # (C_out, C_in)
    b_eff = (w[:, C_d:] @ b + b).reshape(C_out, 1)    # (C_out, 1)

    # lane-dense flattening of the spatial axes
    u_flat = u.reshape(N, C_in, HW)
    d_flat = d.reshape(N, C_d, HW2)

    if batch_block is None:
        batch_block = N                               # toy sizes: whole batch per step
    Nb = batch_block
    assert N % Nb == 0

    out_flat = pl.pallas_call(
        up_kernel,
        out_shape=jax.ShapeDtypeStruct((N, C_out, HW2), u.dtype),
        grid_spec=pl.GridSpec(
            grid=(N // Nb,),
            in_specs=[
                pl.BlockSpec((Nb, C_in, HW), lambda n: (n, 0, 0)),
                pl.BlockSpec((Nb, C_d, HW2), lambda n: (n, 0, 0)),
                pl.BlockSpec((HW, HW2), lambda n: (0, 0)),
                pl.BlockSpec((C_out, C_d), lambda n: (0, 0)),
                pl.BlockSpec((C_out, C_in), lambda n: (0, 0)),
                pl.BlockSpec((C_out, 1), lambda n: (0, 0)),
            ],
            out_specs=pl.BlockSpec((Nb, C_out, HW2), lambda n: (n, 0, 0)),
        ),
        compiler_params=pltpu.CompilerParams(
            dimension_semantics=("parallel",),
        ),
    )(u_flat, d_flat, kT, w_d, w2, b_eff)

    return out_flat.reshape(N, C_out, H2, W2)


def up_reference(u, d, w, b):
    """Pure-JAX reference with the literal module semantics (no folds)."""
    N, C_in, H, W = u.shape
    H2, W2 = 2 * H, 2 * W
    ah = bilinear_matrix(H2, H)
    aw = bilinear_matrix(W2, W)
    t = jnp.einsum('nchw,qw->nchq', u, aw)
    up = jnp.einsum('nchq,ph->ncpq', t, ah)
    u_conv = jnp.einsum('oc,nchw->nohw', w, up) + b[None, :, None, None]
    x = jnp.concatenate([d, u_conv], axis=1)
    return jnp.einsum('oc,nchw->nohw', w, x) + b[None, :, None, None]


if __name__ == "__main__":
    # Up(in_channels=4, out_channels=2)  =>  d has C_in - C_out = 2 channels
    N, C_in, C_out = 2, 4, 2
    H, W = 8, 8
    H2, W2 = 2 * H, 2 * W
    C_d = C_in - C_out

    key = jax.random.PRNGKey(0)
    k_u, k_d, k_w, k_b = jax.random.split(key, 4)
    u = jax.random.normal(k_u, (N, C_in, H, W), jnp.float32)
    d = jax.random.normal(k_d, (N, C_d, H2, W2), jnp.float32)
    # Conv2d(C_in, C_out, kernel_size=1): weight (C_out, C_in, 1, 1) -> (C_out, C_in)
    w = jax.random.normal(k_w, (C_out, C_in), jnp.float32) * 0.1
    b = jax.random.normal(k_b, (C_out,), jnp.float32) * 0.1

    out = up_forward(u, d, w, b)
    out = jax.block_until_ready(out)

    ref = up_reference(u, d, w, b)
    assert out.shape == (N, C_out, H2, W2)
    # Algebraic folds reassociate fp32 sums -> allow small tolerance.
    assert jnp.allclose(out, ref, rtol=1e-4, atol=1e-4), "mismatch vs reference"

    print("KERNEL_OK")
</pallas_src>

<mosaic_0001>
module attributes {stable_mosaic.version = 11 : i64} {
  func.func @up_kernel(%arg0: i32, %arg1: memref<2x4x64xf32, #tpu.memory_space<vmem>>, %arg2: memref<2x2x256xf32, #tpu.memory_space<vmem>>, %arg3: memref<64x256xf32, #tpu.memory_space<vmem>>, %arg4: memref<2x2xf32, #tpu.memory_space<vmem>>, %arg5: memref<2x4xf32, #tpu.memory_space<vmem>>, %arg6: memref<2x1xf32, #tpu.memory_space<vmem>>, %arg7: memref<2x2x256xf32, #tpu.memory_space<vmem>>) attributes {dimension_semantics = [#tpu.dimension_semantics<parallel>], iteration_bounds = array<i64: 1>, scalar_prefetch = 0 : i64, scratch_operands = 0 : i64, tpu.core_type = #tpu.core_type<tc>, window_params = [{transform_indices = @transform_0, window_bounds = array<i64: 2, 4, 64>}, {transform_indices = @transform_1, window_bounds = array<i64: 2, 2, 256>}, {pipeline_mode = #tpu.pipeline_mode<synchronous>, transform_indices = @transform_2, window_bounds = array<i64: 64, 256>}, {pipeline_mode = #tpu.pipeline_mode<synchronous>, transform_indices = @transform_3, window_bounds = array<i64: 2, 2>}, {pipeline_mode = #tpu.pipeline_mode<synchronous>, transform_indices = @transform_4, window_bounds = array<i64: 2, 4>}, {pipeline_mode = #tpu.pipeline_mode<synchronous>, transform_indices = @transform_5, window_bounds = array<i64: 2, 1>}, {transform_indices = @transform_6, window_bounds = array<i64: 2, 2, 256>}]} {
    %c0 = arith.constant 0 : index
    %c0_0 = arith.constant 0 : index
    %c0_1 = arith.constant 0 : index
    %0 = vector.load %arg1[%c0, %c0_0, %c0_1] : memref<2x4x64xf32, #tpu.memory_space<vmem>>, vector<2x4x64xf32>
    %c0_2 = arith.constant 0 : index
    %c0_3 = arith.constant 0 : index
    %c0_4 = arith.constant 0 : index
    %1 = vector.load %arg2[%c0_2, %c0_3, %c0_4] : memref<2x2x256xf32, #tpu.memory_space<vmem>>, vector<2x2x256xf32>
    %c0_5 = arith.constant 0 : index
    %c0_6 = arith.constant 0 : index
    %2 = vector.load %arg3[%c0_5, %c0_6] : memref<64x256xf32, #tpu.memory_space<vmem>>, vector<64x256xf32>
    %c0_7 = arith.constant 0 : index
    %c0_8 = arith.constant 0 : index
    %3 = vector.load %arg4[%c0_7, %c0_8] : memref<2x2xf32, #tpu.memory_space<vmem>>, vector<2x2xf32>
    %c0_9 = arith.constant 0 : index
    %c0_10 = arith.constant 0 : index
    %4 = vector.load %arg5[%c0_9, %c0_10] : memref<2x4xf32, #tpu.memory_space<vmem>>, vector<2x4xf32>
    %c0_11 = arith.constant 0 : index
    %c0_12 = arith.constant 0 : index
    %5 = vector.load %arg6[%c0_11, %c0_12] : memref<2x1xf32, #tpu.memory_space<vmem>>, vector<2x1xf32>
    "tpu.trace_start"() <{level = 10 : i32, message = "oc,ncs->nos"}> : () -> ()
    %cst = arith.constant dense<0.000000e+00> : vector<2x64x2xf32>
    %6 = tpu.matmul %0, %4, %cst {dimension_numbers = #tpu.dot_dimension_numbers<[1], [1], [0, 2], [0], [0, 0, 0, 2, 1, 0], [], []>} : vector<2x4x64xf32>, vector<2x4xf32>, vector<2x64x2xf32> -> vector<2x64x2xf32>
    %7 = tpu.transpose %6, [0, 2, 1] : vector<2x64x2xf32> -> vector<2x2x64xf32>
    "tpu.trace_stop"() : () -> ()
    "tpu.trace_start"() <{level = 10 : i32, message = "nos,st->not"}> : () -> ()
    %cst_13 = arith.constant dense<0.000000e+00> : vector<2x2x256xf32>
    %8 = tpu.matmul %7, %2, %cst_13 {dimension_numbers = #tpu.dot_dimension_numbers<[2], [0], [0, 1], [1], [0, 0, 0, 1, 1, 1], [], []>} : vector<2x2x64xf32>, vector<64x256xf32>, vector<2x2x256xf32> -> vector<2x2x256xf32>
    "tpu.trace_stop"() : () -> ()
    "tpu.trace_start"() <{level = 10 : i32, message = "oc,ncs->nos"}> : () -> ()
    %cst_14 = arith.constant dense<0.000000e+00> : vector<2x256x2xf32>
    %9 = tpu.matmul %1, %3, %cst_14 {dimension_numbers = #tpu.dot_dimension_numbers<[1], [1], [0, 2], [0], [0, 0, 0, 2, 1, 0], [], []>} : vector<2x2x256xf32>, vector<2x2xf32>, vector<2x256x2xf32> -> vector<2x256x2xf32>
    %10 = tpu.transpose %9, [0, 2, 1] : vector<2x256x2xf32> -> vector<2x2x256xf32>
    "tpu.trace_stop"() : () -> ()
    %11 = arith.addf %10, %8 : vector<2x2x256xf32>
    %12 = vector.shape_cast %5 : vector<2x1xf32> to vector<1x2x1xf32>
    %13 = vector.broadcast %12 : vector<1x2x1xf32> to vector<2x2x256xf32>
    %14 = arith.addf %11, %13 : vector<2x2x256xf32>
    %c0_15 = arith.constant 0 : index
    %c0_16 = arith.constant 0 : index
    %c0_17 = arith.constant 0 : index
    %15 = vector.load %arg7[%c0_15, %c0_16, %c0_17] : memref<2x2x256xf32, #tpu.memory_space<vmem>>, vector<2x2x256xf32>
    tpu.vector_store %arg7[%c0_15, %c0_16, %c0_17], %14 {strides = array<i32>} : memref<2x2x256xf32, #tpu.memory_space<vmem>>, vector<2x2x256xf32>,
    return
  }
  func.func @transform_0(%arg0: i32) -> (i32, i32, i32) {
    %c0_i32 = arith.constant 0 : i32
    %c0_i32_0 = arith.constant 0 : i32
    %c0_i32_1 = arith.constant 0 : i32
    return %arg0, %c0_i32, %c0_i32_0 : i32, i32, i32
  }
  func.func @transform_1(%arg0: i32) -> (i32, i32, i32) {
    %c0_i32 = arith.constant 0 : i32
    %c0_i32_0 = arith.constant 0 : i32
    %c0_i32_1 = arith.constant 0 : i32
    return %arg0, %c0_i32, %c0_i32_0 : i32, i32, i32
  }
  func.func @transform_2(%arg0: i32) -> (i32, i32) {
    %c0_i32 = arith.constant 0 : i32
    %c0_i32_0 = arith.constant 0 : i32
    %c0_i32_1 = arith.constant 0 : i32
    return %c0_i32, %c0_i32_0 : i32, i32
  }
  func.func @transform_3(%arg0: i32) -> (i32, i32) {
    %c0_i32 = arith.constant 0 : i32
    %c0_i32_0 = arith.constant 0 : i32
    %c0_i32_1 = arith.constant 0 : i32
    return %c0_i32, %c0_i32_0 : i32, i32
  }
  func.func @transform_4(%arg0: i32) -> (i32, i32) {
    %c0_i32 = arith.constant 0 : i32
    %c0_i32_0 = arith.constant 0 : i32
    %c0_i32_1 = arith.constant 0 : i32
    return %c0_i32, %c0_i32_0 : i32, i32
  }
  func.func @transform_5(%arg0: i32) -> (i32, i32) {
    %c0_i32 = arith.constant 0 : i32
    %c0_i32_0 = arith.constant 0 : i32
    %c0_i32_1 = arith.constant 0 : i32
    return %c0_i32, %c0_i32_0 : i32, i32
  }
  func.func @transform_6(%arg0: i32) -> (i32, i32, i32) {
    %c0_i32 = arith.constant 0 : i32
    %c0_i32_0 = arith.constant 0 : i32
    %c0_i32_1 = arith.constant 0 : i32
    return %arg0, %c0_i32, %c0_i32_0 : i32, i32, i32
  }
}

</mosaic_0001>

<bundles_post_ra>
// kernel: tpu_custom_call.1
= control target key start
LH: loop header
LB: loop body
LE: loop exit
PB: predicated region body
PF: predicated region fallthrough
CT: control target
= control target key end

     0   :  { %11 = vsyncpa [#allocation3], 0  ;;  %s2171_s0 = inlined_call_operand.hbm [shape: f32[2,4,64], index: 0, kind: input, shape index: {}]   ;;  %s2172_s1 = inlined_call_operand.hbm [shape: f32[2,2,256], index: 1, kind: input, shape index: {}]   ;;  %s2173_s2 = inlined_call_operand.hbm [shape: f32[64,256], index: 2, kind: input, shape index: {}]   ;;  %s2174_s3 = inlined_call_operand.vmem [shape: f32[2,2], index: 3, kind: input, shape index: {}]   ;;  %s2175_s4 = inlined_call_operand.vmem [shape: f32[2,4], index: 4, kind: input, shape index: {}]   ;;  %s2176_s5 = inlined_call_operand.vmem [shape: f32[2,1], index: 5, kind: input, shape index: {}]   ;;  %s2177_s6 = inlined_call_operand.hbm [shape: f32[2,2,256], index: 6, kind: output, shape index: {}]  }
   0x1   :  { %12 = vsyncpa [#allocation6], 0 }
   0x2   :  { %13 = vsyncpa [#allocation4], 0  ;;  %s1859_s21 = smov [#allocation5]   ;;  %s1860_s23 = smov [#allocation2]  }
   0x3   :  { %s31_s22 = sshll.u32 %s1859_s21, 4  ;;  %s19_s24 = sshll.u32 %s1860_s23, 4  ;;  %s32_s22 = int_to_ptr.vmem [resolvable:$true] %s31_s22  ;;  %s1905_s24 = int_to_ptr.vmem [resolvable:$true] %s19_s24 }
   0x4   :  { %s1765_s27 = scalar_lea.hbm %s2172_s1, 128 }
   0x5   :  { %p1766_p0 = scmp.ne.s32.totalorder %s2172_s1, %s1765_s27  ;;  %p1769_p1 = scmp.lt.u32.totalorder %s1765_s27, %s2172_s1 }
   0x7   :  { %p1771_p2 = pnand %p1769_p1, %p1766_p0 }
   0x9   :  { %1774 = shalt.err (!%p1771_p2)
}
   0xa   :  { %s1775_s8 = scalar_lea.vmem %s32_s22, 128  ;;  %p1780_p4 = scmp.lt.s32.totalorder %s32_s22, %s32_s22 }
   0xb   :  { %p1776_p3 = scmp.ne.s32.totalorder %s32_s22, %s1775_s8  ;;  %p1781_p5 = scmp.lt.s32.totalorder %s1775_s8, %s1775_s8 }
   0xd   :  { %p1782_p6 = por %p1781_p5, %p1780_p4 }
   0xf   :  { %p1783_p7 = pnand %p1782_p6, %p1776_p3 }
  0x11   :  { %1786 = shalt.err (!%p1783_p7)
}
  0x12   :  { %s1861_s9 = smov 64   ;;  %s1862_s10 = smov 4  }
  0x13   :  { %37 = dma.hbm_to_vmem [thread:$0]  %s2172_s1, 128, %s32_s22, [#allocation6], %s1861_s9, %s1861_s9, %s1862_s10  }
  0x14   :  { %s1787_s15 = scalar_lea.hbm %s2171_s0, 128 }
  0x15   :  { %p1788_p8 = scmp.ne.s32.totalorder %s2171_s0, %s1787_s15  ;;  %p1791_p9 = scmp.lt.u32.totalorder %s1787_s15, %s2171_s0 }
  0x17   :  { %p1793_p10 = pnand %p1791_p9, %p1788_p8 }
  0x19   :  { %1796 = shalt.err (!%p1793_p10)
}
  0x1a   :  { %s1797_s20 = scalar_lea.vmem %s1905_s24, 128  ;;  %p1802_p12 = scmp.lt.s32.totalorder %s1905_s24, %s1905_s24 }
  0x1b   :  { %p1798_p11 = scmp.ne.s32.totalorder %s1905_s24, %s1797_s20  ;;  %p1803_p13 = scmp.lt.s32.totalorder %s1797_s20, %s1797_s20 }
  0x1d   :  { %p1804_p0 = por %p1803_p13, %p1802_p12 }
  0x1f   :  { %p1805_p1 = pnand %p1804_p0, %p1798_p11 }
  0x21   :  { %1808 = shalt.err (!%p1805_p1)
}
  0x22   :  { %25 = dma.hbm_to_vmem [thread:$0]  %s2171_s0, 128, %s1905_s24, [#allocation3], %s1861_s9, %s1861_s9, %s1862_s10  }
  0x23   :  { %s1863_s22 = smov [#allocation7]   ;;  %s1809_s27 = scalar_lea.hbm %s2173_s2, 2048 }
  0x24   :  { %s43_s23 = sshll.u32 %s1863_s22, 4  ;;  %p1810_p2 = scmp.ne.s32.totalorder %s2173_s2, %s1809_s27  ;;  %s44_s23 = int_to_ptr.vmem [resolvable:$true] %s43_s23 }
  0x25   :  { %p1813_p3 = scmp.lt.u32.totalorder %s1809_s27, %s2173_s2 }
  0x27   :  { %p1815_p4 = pnand %p1813_p3, %p1810_p2 }
  0x29   :  { %1818 = shalt.err (!%p1815_p4)
}
  0x2a   :  { %s1819_s8 = scalar_lea.vmem %s44_s23, 2048  ;;  %p1824_p6 = scmp.lt.s32.totalorder %s44_s23, %s44_s23 }
  0x2b   :  { %p1820_p5 = scmp.ne.s32.totalorder %s44_s23, %s1819_s8  ;;  %p1825_p7 = scmp.lt.s32.totalorder %s1819_s8, %s1819_s8 }
  0x2d   :  { %p1826_p8 = por %p1825_p7, %p1824_p6 }
  0x2f   :  { %p1827_p9 = pnand %p1826_p8, %p1820_p5 }
  0x31   :  { %1830 = shalt.err (!%p1827_p9)
}
  0x32   :  { %s1864_s0 = smov 256   ;;  %s1865_s24 = smov 16  }
  0x33   :  { %49 = dma.hbm_to_vmem [thread:$0]  %s2173_s2, 2048, %s44_s23, [#allocation6], %s1864_s0, %s1864_s0, %s1865_s24  }
  0x34   :  { %1853 = dma.done.wait [#allocation3], 128  }
  0x35   :  { %1854 = vsyncadd [#allocation3], 4294967168 }
  0x36   :  { %1855 = dma.done.wait [#allocation6], 2176  }
  0x37   :  { %1856 = vsyncadd [#allocation6], 4294965120  ;;  %v65_v0 = vld [vmem:[#allocation2] sm:$0xf]  ;;  %vm152_vm0 = vcmask 31744   ;;  %v70_v21 = vld [vmem:[#allocation7 + $0x8] sm:$0xff] }
  0x38   :  { %88 = vxpose.xlu0.b32.start.end [1/1] (short) (narrow) %v65_v0, 64  ;;  %v86_v1 = vld [vmem:[%s2175_s4] sm:$0x3]  ;;  %v66_v2 = vld [vmem:[#allocation2 + $0x4] sm:$0xf]  ;;  %v72_v22 = vld [vmem:[#allocation7 + $0x18] sm:$0xff] }
  0x39   :  { %1611 = vmatprep.subr.msk.mxu0 %vm152_vm0, %v86_v1  ;;  %v1959_v3 = vld.sshfl [vmem:[#allocation5] sm:$0x33 pattern:$0x76325410]  ;;  %v1735_v23 = vpack.c.bf16 %v72_v22, %v70_v21  ;;  %v69_v24 = vld [vmem:[#allocation7] sm:$0xff]  ;;  %v71_v25 = vld [vmem:[#allocation7 + $0x10] sm:$0xff] }
  0x3a   :  { %1612 = vmatpush3.xpose.msk.msra.mxu0 %vm152_vm0, %v86_v1  ;;  %v517_v4 = vcombine.high %v1959_v3, %v1959_v3  ;;  %v74_v26 = vld [vmem:[#allocation7 + $0x28] sm:$0xff]  ;;  %v1737_v27 = vpack.c.bf16 %v71_v25, %v69_v24  ;;  %v76_v28 = vld [vmem:[#allocation7 + $0x38] sm:$0xff]  ;;  %v73_v29 = vld [vmem:[#allocation7 + $0x20] sm:$0xff]  ;;  %vm658_vm1 = vcmask 15360   ;;  %v1866_v55 = vmov 0.0  }
  0x3b   :  { %v75_v30 = vld [vmem:[#allocation7 + $0x30] sm:$0xff]  ;;  %1736 = vmatprep.subr.bf16.mxu1 %v1735_v23  ;;  %v1739_v31 = vpack.c.bf16 %v76_v28, %v74_v26  ;;  %v78_v32 = vld [vmem:[#allocation7 + $0x48] sm:$0xff]  ;;  %v80_v33 = vld [vmem:[#allocation7 + $0x58] sm:$0xff]  ;;  %490 = vmatprep.mubr.f32.mxu1 %v1866_v55  ;;  %vm423_vm2 = vcmask 523264  }
  0x3c   :  { %562 = vxpose.xlu1.b32.start.end [1/1] (short) %v517_v4, 128  ;;  %1738 = vmatpush1.bf16.msra.mxu1 %v1737_v27  ;;  %v1741_v34 = vpack.c.bf16 %v75_v30, %v73_v29  ;;  %v1743_v35 = vpack.c.bf16 %v80_v33, %v78_v32  ;;  %v77_v36 = vld [vmem:[#allocation7 + $0x40] sm:$0xff]  ;;  %v79_v37 = vld [vmem:[#allocation7 + $0x50] sm:$0xff]  ;;  %v1461_v47 = vld.sshfl [vmem:[#allocation5 + $0x4] sm:$0x33 pattern:$0x76325410] }
  0x3d   :  { %1740 = vmatprep.subr.bf16.mxu1 %v1739_v31  ;;  %v1745_v38 = vpack.c.bf16 %v79_v37, %v77_v36  ;;  %v82_v50 = vld [vmem:[#allocation7 + $0x68] sm:$0xff]  ;;  %v84_v51 = vld [vmem:[#allocation7 + $0x78] sm:$0xff]  ;;  %v81_v52 = vld [vmem:[#allocation7 + $0x60] sm:$0xff] }
  0x3e   :  { %v1747_v53 = vpack.c.bf16 %v84_v51, %v82_v50  ;;  %v83_v54 = vld [vmem:[#allocation7 + $0x70] sm:$0xff] }
  0x3f   :  { %v85_v56 = vld [vmem:[%s2174_s3] sm:$0x3]  ;;  %v1749_v57 = vpack.c.bf16 %v83_v54, %v81_v52 }
  0x40   :  { %1742 = vmatpush1.bf16.msra.mxu1 %v1741_v34  ;;  %1637 = vmatprep.subr.msk.mxu0 %vm658_vm1, %v85_v56 }
  0x41   :  { %1744 = vmatprep.subr.bf16.mxu1 %v1743_v35 }
  0x44   :  { %1746 = vmatpush1.bf16.msra.mxu1 %v1745_v38 }
  0x45   :  { %1748 = vmatprep.subr.bf16.mxu1 %v1747_v53 }
  0x48   :  { %1750 = vmatpush1.bf16.msra.mxu1 %v1749_v57 }
  0x49   :  { %1751 = vmatprep.subr.msk.mxu1 %vm658_vm1, %v85_v56 }
  0x55   :  { %120 = vxpose.xlu0.b32.start.end [1/1] (short) (narrow) %v66_v2, 64 }
  0xb8   :  { %v104_v5 = vpop.trf.xlu0 }
  0xb9   :  { %1613 = vmatprep.mubr.msk.f32.mxu0 %vm152_vm0, %v104_v5 }
  0xbc   :  { %v105_v6 = vpop.trf.xlu0  ;;  %v1985_v0 = vpop.trf.xlu1 }
  0xbd   :  { %1614 = vmatmul.mubr.msk.f32.vlgmr.msra.gmra.mrb[0].mxu0 %vm152_vm0, %v105_v6 }
  0xbe   :  { %1638 = vmatpush3.xpose.msk.msra.mxu0 %vm658_vm1, %v85_v56 }
  0xc0   :  { %v106_v7 = vpop.trf.xlu0  ;;  %v1988_v1 = vpop.trf.xlu1 }
  0xc1   :  { %1616 = vmatprep.mubr.msk.f32.mxu0 %vm152_vm0, %v106_v7 }
  0xc4   :  { %v107_v8 = vpop.trf.xlu0  ;;  %v1990_v2 = vpop.trf.xlu1 }
  0xc5   :  { %1617 = vmatmul.mubr.msk.f32.gmra.mrb[2].mxu0 %vm152_vm0, %v107_v8 }
  0xc8   :  { %v108_v9 = vpop.trf.xlu0  ;;  %v1992_v4 = vpop.trf.xlu1 }
  0xc9   :  { %1619 = vmatprep.mubr.msk.f32.mxu0 %vm152_vm0, %v108_v9 }
  0xcc   :  { %v109_v10 = vpop.trf.xlu0  ;;  %v1994_v5 = vpop.trf.xlu1 }
  0xcd   :  { %1620 = vmatmul.mubr.msk.f32.gmra.mrb[4].mxu0 %vm152_vm0, %v109_v10 }
  0xd0   :  { %v110_v11 = vpop.trf.xlu0  ;;  %v1996_v6 = vpop.trf.xlu1 }
  0xd1   :  { %1622 = vmatprep.mubr.msk.f32.mxu0 %vm152_vm0, %v110_v11 }
  0xd4   :  { %v111_v12 = vpop.trf.xlu0  ;;  %v1998_v7 = vpop.trf.xlu1 }
  0xd5   :  { %1623 = vmatmul.mubr.msk.f32.gmra.mrb[6].mxu0 %vm152_vm0, %v111_v12 }
  0xd8   :  { %v136_v13 = vpop.trf.xlu0  ;;  %v2000_v8 = vpop.trf.xlu1 }
  0xd9   :  { %1625 = vmatprep.mubr.msk.f32.mxu0 %vm152_vm0, %v136_v13 }
  0xdc   :  { %v137_v14 = vpop.trf.xlu0  ;;  %v2002_v9 = vpop.trf.xlu1 }
  0xdd   :  { %1626 = vmatmul.mubr.msk.f32.gmra.mrb[8].mxu0 %vm152_vm0, %v137_v14 }
  0xe0   :  { %v138_v15 = vpop.trf.xlu0  ;;  %v2004_v10 = vpop.trf.xlu1 }
  0xe1   :  { %1628 = vmatprep.mubr.msk.f32.mxu0 %vm152_vm0, %v138_v15 }
  0xe4   :  { %v139_v16 = vpop.trf.xlu0  ;;  %v2006_v11 = vpop.trf.xlu1 }
  0xe5   :  { %1629 = vmatmul.mubr.msk.f32.gmra.mrb[10].mxu0 %vm152_vm0, %v139_v16 }
  0xe8   :  { %v140_v17 = vpop.trf.xlu0  ;;  %v2008_v12 = vpop.trf.xlu1 }
  0xe9   :  { %1631 = vmatprep.mubr.msk.f32.mxu0 %vm152_vm0, %v140_v17  ;;  %v1867_v17 = vmov 1983009808  }
  0xec   :  { %v141_v18 = vpop.trf.xlu0  ;;  %v590_v13 = vpop.trf.xlu1 }
  0xed   :  { %1632 = vmatmul.mubr.msk.f32.gmra.mrb[12].mxu0 %vm152_vm0, %v141_v18  ;;  %v417_v18 = vunpack.c.l.s4 %v1867_v17 }
  0xf0   :  { %v142_v19 = vpop.trf.xlu0  ;;  %v591_v14 = vpop.trf.xlu1 }
  0xf1   :  { %1634 = vmatprep.mubr.msk.f32.mxu0 %vm152_vm0, %v142_v19  ;;  %v419_v19 = vlaneseq }
  0xf3   :  { %v420_v21 = vshrl.u32 %v419_v19, 7 }
  0xf4   :  { %v143_v20 = vpop.trf.xlu0  ;;  %v592_v15 = vpop.trf.xlu1 }
  0xf5   :  { %1635 = vmatmul.mubr.msk.f32.gmra.mrb[14].mxu0 %vm152_vm0, %v143_v20  ;;  %v418_v20 = vunpack.c.0.s8 %v417_v18 }
  0xf7   :  { %v2010_v23 = vsub.s32 %v418_v20, %v420_v21 }
  0xf8   :  { %v593_v16 = vpop.trf.xlu1 }
 0x190   :  { %v1615_v39 = vpop.f32.mrb[0].mxu0 }
 0x191   :  { %v270_v40 = vpop.f32.mrb[1].mxu0 }
 0x192   :  { %349 = vxpose.xlu1.b32.start [1/8] (short) (narrow) %v270_v40, 8 }
 0x196   :  { %350 = vxpose.xlu1.b32.cont [2/8] (short) (narrow) %v1615_v39, 8 }
 0x198   :  { %v1618_v41 = vpop.f32.mrb[2].mxu0 }
 0x199   :  { %v280_v42 = vpop.f32.mrb[3].mxu0 }
 0x19a   :  { %351 = vxpose.xlu1.b32.cont [3/8] (short) (narrow) %v280_v42, 8 }
 0x19e   :  { %352 = vxpose.xlu1.b32.cont [4/8] (short) (narrow) %v1618_v41, 8 }
 0x1a0   :  { %v1621_v43 = vpop.f32.mrb[4].mxu0 }
 0x1a1   :  { %v290_v44 = vpop.f32.mrb[5].mxu0 }
 0x1a2   :  { %353 = vxpose.xlu1.b32.cont [5/8] (short) (narrow) %v290_v44, 8 }
 0x1a6   :  { %354 = vxpose.xlu1.b32.cont [6/8] (short) (narrow) %v1621_v43, 8 }
 0x1a8   :  { %v1624_v45 = vpop.f32.mrb[6].mxu0 }
 0x1a9   :  { %v300_v46 = vpop.f32.mrb[7].mxu0 }
 0x1aa   :  { %355 = vxpose.xlu1.b32.cont [7/8] (short) (narrow) %v300_v46, 8 }
 0x1ae   :  { %356 = vxpose.xlu1.b32.end [8/8] (short) (narrow) %v1624_v45, 8 }
 0x1b0   :  { %v1627_v48 = vpop.f32.mrb[8].mxu0 }
 0x1b1   :  { %v310_v49 = vpop.f32.mrb[9].mxu0 }
 0x1b2   :  { %381 = vxpose.xlu0.b32.start [1/8] (short) (narrow) %v310_v49, 8  ;;  %594 = vxpose.xlu1.b32.start.end [1/1] (short) %v1461_v47, 128 }
 0x1b6   :  { %382 = vxpose.xlu0.b32.cont [2/8] (short) (narrow) %v1627_v48, 8 }
 0x1b8   :  { %v1630_v58 = vpop.f32.mrb[10].mxu0 }
 0x1b9   :  { %v320_v59 = vpop.f32.mrb[11].mxu0 }
 0x1ba   :  { %383 = vxpose.xlu0.b32.cont [3/8] (short) (narrow) %v320_v59, 8 }
 0x1be   :  { %384 = vxpose.xlu0.b32.cont [4/8] (short) (narrow) %v1630_v58, 8 }
 0x1c0   :  { %v1633_v60 = vpop.f32.mrb[12].mxu0 }
 0x1c1   :  { %v330_v61 = vpop.f32.mrb[13].mxu0 }
 0x1c2   :  { %385 = vxpose.xlu0.b32.cont [5/8] (short) (narrow) %v330_v61, 8 }
 0x1c6   :  { %386 = vxpose.xlu0.b32.cont [6/8] (short) (narrow) %v1633_v60, 8 }
 0x1c8   :  { %v1636_v62 = vpop.f32.mrb[14].mxu0 }
 0x1c9   :  { %v340_v63 = vpop.f32.mrb[15].mxu0 }
 0x1ca   :  { %387 = vxpose.xlu0.b32.cont [7/8] (short) (narrow) %v340_v63, 8 }
 0x1ce   :  { %388 = vxpose.xlu0.b32.end [8/8] (short) (narrow) %v1636_v62, 8 }
 0x1d2   :  { %530 = vxpose.xlu0.b32.start.end [1/1] (short) %v1959_v3, 128  ;;  %v525_v3 = vcombine.high %v1461_v47, %v1461_v47 }
 0x20f   :  { %626 = vxpose.xlu0.b32.start.end [1/1] (short) %v525_v3, 128 }
 0x212   :  { %v365_v22 = vpop.trf.xlu1 }
 0x232   :  { %v397_v24 = vpop.trf.xlu0  ;;  %v610_v25 = vpop.trf.xlu1 }
 0x233   :  { %v415_v26 = vcombine.low %v365_v22, %v397_v24 }
 0x235   :  { %v422_v27 = vrot.slane %v415_v26, %v2010_v23 }
 0x236   :  { %v611_v28 = vpop.trf.xlu1 }
 0x237   :  { %1459 = vmatmul.mubr.msk.f32.vlgmr.msra.gmra.mrb[0].mxu1 %vm423_vm2, %v422_v27 }
 0x238   :  { %1752 = vmatpush3.xpose.msk.msra.mxu1 %vm658_vm1, %v85_v56  ;;  %1681 = vmatprep.mubr.msk.f32.mxu1 %vm658_vm1, %v590_v13 }
 0x23a   :  { %v612_v29 = vpop.trf.xlu1 }
 0x23b   :  { %1682 = vmatmul.mubr.msk.f32.vlgmr.msra.gmra.mrb[2].mxu1 %vm658_vm1, %v591_v14 }
 0x23c   :  { %1684 = vmatprep.mubr.msk.f32.mxu1 %vm658_vm1, %v592_v15 }
 0x23e   :  { %v613_v30 = vpop.trf.xlu1 }
 0x23f   :  { %1685 = vmatmul.mubr.msk.f32.gmra.mrb[4].mxu1 %vm658_vm1, %v593_v16 }
 0x240   :  { %1687 = vmatprep.mubr.msk.f32.mxu1 %vm658_vm1, %v610_v25 }
 0x242   :  { %v614_v31 = vpop.trf.xlu1 }
 0x243   :  { %1688 = vmatmul.mubr.msk.f32.gmra.mrb[6].mxu1 %vm658_vm1, %v611_v28 }
 0x244   :  { %1690 = vmatprep.mubr.msk.f32.mxu1 %vm658_vm1, %v612_v29 }
 0x246   :  { %v615_v32 = vpop.trf.xlu1 }
 0x247   :  { %1691 = vmatmul.mubr.msk.f32.gmra.mrb[8].mxu1 %vm658_vm1, %v613_v30 }
 0x248   :  { %1693 = vmatprep.mubr.msk.f32.mxu1 %vm658_vm1, %v614_v31 }
 0x24a   :  { %v616_v33 = vpop.trf.xlu1 }
 0x24b   :  { %1694 = vmatmul.mubr.msk.f32.gmra.mrb[10].mxu1 %vm658_vm1, %v615_v32 }
 0x24c   :  { %1696 = vmatprep.mubr.msk.f32.mxu1 %vm658_vm1, %v616_v33 }
 0x24e   :  { %v617_v34 = vpop.trf.xlu1 }
 0x24f   :  { %1697 = vmatmul.mubr.msk.f32.gmra.mrb[12].mxu1 %vm658_vm1, %v617_v34 }
 0x252   :  { %v546_v35 = vpop.trf.xlu0  ;;  %v618_v36 = vpop.trf.xlu1 }
 0x253   :  { %1639 = vmatprep.mubr.msk.f32.mxu0 %vm658_vm1, %v546_v35  ;;  %1699 = vmatprep.mubr.msk.f32.mxu1 %vm658_vm1, %v618_v36 }
 0x256   :  { %v547_v37 = vpop.trf.xlu0  ;;  %v619_v38 = vpop.trf.xlu1 }
 0x257   :  { %1640 = vmatmul.mubr.msk.f32.vlgmr.msra.gmra.mrb[16].mxu0 %vm658_vm1, %v547_v37  ;;  %1700 = vmatmul.mubr.msk.f32.gmra.mrb[14].mxu1 %vm658_vm1, %v619_v38 }
 0x25a   :  { %v548_v39 = vpop.trf.xlu0  ;;  %v620_v40 = vpop.trf.xlu1 }
 0x25b   :  { %1642 = vmatprep.mubr.msk.f32.mxu0 %vm658_vm1, %v548_v39  ;;  %1702 = vmatprep.mubr.msk.f32.mxu1 %vm658_vm1, %v620_v40 }
 0x25e   :  { %v549_v41 = vpop.trf.xlu0  ;;  %v621_v42 = vpop.trf.xlu1 }
 0x25f   :  { %1643 = vmatmul.mubr.msk.f32.gmra.mrb[18].mxu0 %vm658_vm1, %v549_v41  ;;  %1703 = vmatmul.mubr.msk.f32.gmra.mrb[16].mxu1 %vm658_vm1, %v621_v42 }
 0x262   :  { %v550_v43 = vpop.trf.xlu0  ;;  %v622_v44 = vpop.trf.xlu1 }
 0x263   :  { %1645 = vmatprep.mubr.msk.f32.mxu0 %vm658_vm1, %v550_v43  ;;  %1705 = vmatprep.mubr.msk.f32.mxu1 %vm658_vm1, %v622_v44 }
 0x266   :  { %v551_v45 = vpop.trf.xlu0  ;;  %v623_v46 = vpop.trf.xlu1 }
 0x267   :  { %1646 = vmatmul.mubr.msk.f32.gmra.mrb[20].mxu0 %vm658_vm1, %v551_v45  ;;  %1706 = vmatmul.mubr.msk.f32.gmra.mrb[18].mxu1 %vm658_vm1, %v623_v46 }
 0x26a   :  { %v552_v47 = vpop.trf.xlu0  ;;  %v624_v48 = vpop.trf.xlu1 }
 0x26b   :  { %1648 = vmatprep.mubr.msk.f32.mxu0 %vm658_vm1, %v552_v47  ;;  %1708 = vmatprep.mubr.msk.f32.mxu1 %vm658_vm1, %v624_v48 }
 0x26e   :  { %v553_v49 = vpop.trf.xlu0  ;;  %v625_v50 = vpop.trf.xlu1 }
 0x26f   :  { %1649 = vmatmul.mubr.msk.f32.gmra.mrb[22].mxu0 %vm658_vm1, %v553_v49  ;;  %1709 = vmatmul.mubr.msk.f32.gmra.mrb[20].mxu1 %vm658_vm1, %v625_v50 }
 0x272   :  { %v554_v51 = vpop.trf.xlu0 }
 0x273   :  { %1651 = vmatprep.mubr.msk.f32.mxu0 %vm658_vm1, %v554_v51 }
 0x276   :  { %v555_v52 = vpop.trf.xlu0 }
 0x277   :  { %1652 = vmatmul.mubr.msk.f32.gmra.mrb[24].mxu0 %vm658_vm1, %v555_v52 }
 0x27a   :  { %v556_v53 = vpop.trf.xlu0 }
 0x27b   :  { %1654 = vmatprep.mubr.msk.f32.mxu0 %vm658_vm1, %v556_v53 }
 0x27e   :  { %v557_v54 = vpop.trf.xlu0 }
 0x27f   :  { %1655 = vmatmul.mubr.msk.f32.gmra.mrb[26].mxu0 %vm658_vm1, %v557_v54 }
 0x282   :  { %v558_v55 = vpop.trf.xlu0 }
 0x283   :  { %1657 = vmatprep.mubr.msk.f32.mxu0 %vm658_vm1, %v558_v55 }
 0x286   :  { %v559_v56 = vpop.trf.xlu0 }
 0x287   :  { %1658 = vmatmul.mubr.msk.f32.gmra.mrb[28].mxu0 %vm658_vm1, %v559_v56 }
 0x28a   :  { %v560_v57 = vpop.trf.xlu0 }
 0x28b   :  { %1660 = vmatprep.mubr.msk.f32.mxu0 %vm658_vm1, %v560_v57 }
 0x28e   :  { %v561_v58 = vpop.trf.xlu0 }
 0x28f   :  { %1661 = vmatmul.mubr.msk.f32.gmra.mrb[30].mxu0 %vm658_vm1, %v561_v58 }
 0x290   :  { %1663 = vmatprep.mubr.msk.f32.mxu0 %vm658_vm1, %v1985_v0 }
 0x292   :  { %v642_v59 = vpop.trf.xlu0 }
 0x293   :  { %1664 = vmatmul.mubr.msk.f32.gmra.mrb[32].mxu0 %vm658_vm1, %v1988_v1  ;;  %1711 = vmatprep.mubr.msk.f32.mxu1 %vm658_vm1, %v642_v59 }
 0x294   :  { %1666 = vmatprep.mubr.msk.f32.mxu0 %vm658_vm1, %v1990_v2 }
 0x296   :  { %v643_v60 = vpop.trf.xlu0 }
 0x297   :  { %1667 = vmatmul.mubr.msk.f32.gmra.mrb[34].mxu0 %vm658_vm1, %v1992_v4  ;;  %1712 = vmatmul.mubr.msk.f32.gmra.mrb[22].mxu1 %vm658_vm1, %v643_v60 }
 0x298   :  { %1669 = vmatprep.mubr.msk.f32.mxu0 %vm658_vm1, %v1994_v5 }
 0x29a   :  { %v644_v61 = vpop.trf.xlu0 }
 0x29b   :  { %1670 = vmatmul.mubr.msk.f32.gmra.mrb[36].mxu0 %vm658_vm1, %v1996_v6  ;;  %1714 = vmatprep.mubr.msk.f32.mxu1 %vm658_vm1, %v644_v61 }
 0x29c   :  { %1672 = vmatprep.mubr.msk.f32.mxu0 %vm658_vm1, %v1998_v7 }
 0x29e   :  { %v645_v62 = vpop.trf.xlu0 }
 0x29f   :  { %1673 = vmatmul.mubr.msk.f32.gmra.mrb[38].mxu0 %vm658_vm1, %v2000_v8  ;;  %1715 = vmatmul.mubr.msk.f32.gmra.mrb[24].mxu1 %vm658_vm1, %v645_v62 }
 0x2a0   :  { %1675 = vmatprep.mubr.msk.f32.mxu0 %vm658_vm1, %v2002_v9 }
 0x2a2   :  { %v646_v63 = vpop.trf.xlu0 }
 0x2a3   :  { %1676 = vmatmul.mubr.msk.f32.gmra.mrb[40].mxu0 %vm658_vm1, %v2004_v10  ;;  %1717 = vmatprep.mubr.msk.f32.mxu1 %vm658_vm1, %v646_v63 }
 0x2a4   :  { %1678 = vmatprep.mubr.msk.f32.mxu0 %vm658_vm1, %v2006_v11 }
 0x2a6   :  { %v647_v0 = vpop.trf.xlu0 }
 0x2a7   :  { %1679 = vmatmul.mubr.msk.f32.gmra.mrb[42].mxu0 %vm658_vm1, %v2008_v12  ;;  %1718 = vmatmul.mubr.msk.f32.gmra.mrb[26].mxu1 %vm658_vm1, %v647_v0 }
 0x2aa   :  { %v648_v1 = vpop.trf.xlu0 }
 0x2ab   :  { %1720 = vmatprep.mubr.msk.f32.mxu1 %vm658_vm1, %v648_v1 }
 0x2ae   :  { %v649_v2 = vpop.trf.xlu0 }
 0x2af   :  { %1721 = vmatmul.mubr.msk.f32.gmra.mrb[28].mxu1 %vm658_vm1, %v649_v2 }
 0x2b2   :  { %v650_v4 = vpop.trf.xlu0 }
 0x2b3   :  { %1723 = vmatprep.mubr.msk.f32.mxu1 %vm658_vm1, %v650_v4 }
 0x2b6   :  { %v651_v5 = vpop.trf.xlu0 }
 0x2b7   :  { %1724 = vmatmul.mubr.msk.f32.gmra.mrb[30].mxu1 %vm658_vm1, %v651_v5 }
 0x2ba   :  { %v652_v6 = vpop.trf.xlu0 }
 0x2bb   :  { %1726 = vmatprep.mubr.msk.f32.mxu1 %vm658_vm1, %v652_v6 }
 0x2be   :  { %v653_v7 = vpop.trf.xlu0 }
 0x2bf   :  { %1727 = vmatmul.mubr.msk.f32.gmra.mrb[32].mxu1 %vm658_vm1, %v653_v7 }
 0x2c2   :  { %v654_v8 = vpop.trf.xlu0 }
 0x2c3   :  { %1729 = vmatprep.mubr.msk.f32.mxu1 %vm658_vm1, %v654_v8 }
 0x2c6   :  { %v655_v9 = vpop.trf.xlu0 }
 0x2c7   :  { %1730 = vmatmul.mubr.msk.f32.gmra.mrb[34].mxu1 %vm658_vm1, %v655_v9 }
 0x2ca   :  { %v656_v10 = vpop.trf.xlu0 }
 0x2cb   :  { %1732 = vmatprep.mubr.msk.f32.mxu1 %vm658_vm1, %v656_v10 }
 0x2ce   :  { %v657_v11 = vpop.trf.xlu0 }
 0x2cf   :  { %1733 = vmatmul.mubr.msk.f32.gmra.mrb[36].mxu1 %vm658_vm1, %v657_v11 }
 0x30a   :  { %v2090_v3 = vpop.f32.mrb[0].mxu1 }
 0x30b   :  { %v2092_v12 = vpop.f32.mrb[1].mxu1 }
 0x30c   :  { %v499_v13 = vcombine.low %v2090_v3, %v2092_v12 }
 0x30e   :  { %v2096_v14 = vpop.f32.mrb[2].mxu1 }
 0x30f   :  { %v2098_v15 = vpop.f32.mrb[3].mxu1 }
 0x312   :  { %v2100_v16 = vpop.f32.mrb[4].mxu1 }
 0x313   :  { %v2102_v17 = vpop.f32.mrb[5].mxu1 }
 0x316   :  { %v1689_v18 = vpop.f32.mrb[6].mxu1 }
 0x317   :  { %v1080_v19 = vpop.f32.mrb[7].mxu1 }
 0x31a   :  { %v2104_v20 = vpop.f32.mrb[8].mxu1 }
 0x31b   :  { %v1090_v21 = vpop.f32.mrb[9].mxu1 }
 0x31e   :  { %v2106_v22 = vpop.f32.mrb[10].mxu1 }
 0x31f   :  { %v2108_v24 = vpop.f32.mrb[11].mxu1 }
 0x322   :  { %v2110_v25 = vpop.f32.mrb[12].mxu1 }
 0x323   :  { %v2112_v26 = vpop.f32.mrb[13].mxu1 }
 0x32a   :  { %v1641_v27 = vpop.f32.mrb[16].mxu0  ;;  %v2114_v28 = vpop.f32.mrb[14].mxu1 }
 0x32b   :  { %v920_v29 = vpop.f32.mrb[17].mxu0  ;;  %v2116_v30 = vpop.f32.mrb[15].mxu1 }
 0x32c   :  { %1239 = vxpose.xlu1.b32.start [1/16] (narrow) %v920_v29, 8 }
 0x330   :  { %1240 = vxpose.xlu1.b32.cont [2/16] (narrow) %v1641_v27, 8 }
 0x332   :  { %v1644_v31 = vpop.f32.mrb[18].mxu0  ;;  %v2118_v32 = vpop.f32.mrb[16].mxu1 }
 0x333   :  { %v930_v33 = vpop.f32.mrb[19].mxu0  ;;  %v2120_v34 = vpop.f32.mrb[17].mxu1 }
 0x334   :  { %1241 = vxpose.xlu1.b32.cont [3/16] (narrow) %v930_v33, 8 }
 0x338   :  { %1242 = vxpose.xlu1.b32.cont [4/16] (narrow) %v1644_v31, 8 }
 0x33a   :  { %v1647_v35 = vpop.f32.mrb[20].mxu0  ;;  %v2122_v36 = vpop.f32.mrb[18].mxu1 }
 0x33b   :  { %v940_v37 = vpop.f32.mrb[21].mxu0  ;;  %v2124_v38 = vpop.f32.mrb[19].mxu1 }
 0x33c   :  { %1243 = vxpose.xlu1.b32.cont [5/16] (narrow) %v940_v37, 8 }
 0x340   :  { %1244 = vxpose.xlu1.b32.cont [6/16] (narrow) %v1647_v35, 8 }
 0x342   :  { %v1650_v39 = vpop.f32.mrb[22].mxu0  ;;  %v2126_v40 = vpop.f32.mrb[20].mxu1 }
 0x343   :  { %v950_v41 = vpop.f32.mrb[23].mxu0  ;;  %v2128_v42 = vpop.f32.mrb[21].mxu1 }
 0x344   :  { %1245 = vxpose.xlu1.b32.cont [7/16] (narrow) %v950_v41, 8 }
 0x348   :  { %1246 = vxpose.xlu1.b32.cont [8/16] (narrow) %v1650_v39, 8 }
 0x34a   :  { %v1653_v43 = vpop.f32.mrb[24].mxu0 }
 0x34b   :  { %v960_v44 = vpop.f32.mrb[25].mxu0 }
 0x34c   :  { %1247 = vxpose.xlu1.b32.cont [9/16] (narrow) %v960_v44, 8 }
 0x350   :  { %1248 = vxpose.xlu1.b32.cont [10/16] (narrow) %v1653_v43, 8 }
 0x352   :  { %v1656_v45 = vpop.f32.mrb[26].mxu0 }
 0x353   :  { %v970_v46 = vpop.f32.mrb[27].mxu0 }
 0x354   :  { %1249 = vxpose.xlu1.b32.cont [11/16] (narrow) %v970_v46, 8 }
 0x358   :  { %1250 = vxpose.xlu1.b32.cont [12/16] (narrow) %v1656_v45, 8 }
 0x35a   :  { %v1659_v47 = vpop.f32.mrb[28].mxu0 }
 0x35b   :  { %v980_v48 = vpop.f32.mrb[29].mxu0 }
 0x35c   :  { %1251 = vxpose.xlu1.b32.cont [13/16] (narrow) %v980_v48, 8 }
 0x360   :  { %1252 = vxpose.xlu1.b32.cont [14/16] (narrow) %v1659_v47, 8 }
 0x362   :  { %v1662_v49 = vpop.f32.mrb[30].mxu0 }
 0x363   :  { %v990_v50 = vpop.f32.mrb[31].mxu0 }
 0x364   :  { %1253 = vxpose.xlu1.b32.cont [15/16] (narrow) %v990_v50, 8 }
 0x366   :  { %v1665_v51 = vpop.f32.mrb[32].mxu0 }
 0x367   :  { %v1000_v52 = vpop.f32.mrb[33].mxu0 }
 0x368   :  { %1254 = vxpose.xlu1.b32.end [16/16] (narrow) %v1662_v49, 8  ;;  %1271 = vxpose.xlu0.b32.start [1/16] (narrow) %v1000_v52, 8 }
 0x36a   :  { %v1668_v53 = vpop.f32.mrb[34].mxu0  ;;  %v1713_v54 = vpop.f32.mrb[22].mxu1 }
 0x36b   :  { %v1010_v55 = vpop.f32.mrb[35].mxu0  ;;  %v1160_v56 = vpop.f32.mrb[23].mxu1 }
 0x36c   :  { %1303 = vxpose.xlu1.b32.start [1/16] (narrow) %v1080_v19, 8  ;;  %1272 = vxpose.xlu0.b32.cont [2/16] (narrow) %v1665_v51, 8 }
 0x36e   :  { %v1671_v57 = vpop.f32.mrb[36].mxu0 }
 0x36f   :  { %v1020_v58 = vpop.f32.mrb[37].mxu0 }
 0x370   :  { %1304 = vxpose.xlu1.b32.cont [2/16] (narrow) %v1689_v18, 8  ;;  %1273 = vxpose.xlu0.b32.cont [3/16] (narrow) %v1010_v55, 8 }
 0x372   :  { %v1674_v59 = vpop.f32.mrb[38].mxu0  ;;  %v1716_v60 = vpop.f32.mrb[24].mxu1 }
 0x373   :  { %v1030_v61 = vpop.f32.mrb[39].mxu0  ;;  %v1170_v62 = vpop.f32.mrb[25].mxu1 }
 0x374   :  { %1305 = vxpose.xlu1.b32.cont [3/16] (narrow) %v1090_v21, 8  ;;  %1274 = vxpose.xlu0.b32.cont [4/16] (narrow) %v1668_v53, 8 }
 0x376   :  { %v1677_v63 = vpop.f32.mrb[40].mxu0 }
 0x377   :  { %v1040_v0 = vpop.f32.mrb[41].mxu0 }
 0x378   :  { %1306 = vxpose.xlu1.b32.cont [4/16] (narrow) %v2104_v20, 8  ;;  %1275 = vxpose.xlu0.b32.cont [5/16] (narrow) %v1020_v58, 8 }
 0x37a   :  { %v1680_v1 = vpop.f32.mrb[42].mxu0  ;;  %v1719_v2 = vpop.f32.mrb[26].mxu1 }
 0x37b   :  { %v1050_v4 = vpop.f32.mrb[43].mxu0  ;;  %v1180_v5 = vpop.f32.mrb[27].mxu1 }
 0x37c   :  { %1307 = vxpose.xlu1.b32.cont [5/16] (narrow) %v2108_v24, 8  ;;  %1276 = vxpose.xlu0.b32.cont [6/16] (narrow) %v1671_v57, 8 }
 0x380   :  { %1308 = vxpose.xlu1.b32.cont [6/16] (narrow) %v2106_v22, 8  ;;  %1277 = vxpose.xlu0.b32.cont [7/16] (narrow) %v1030_v61, 8 }
 0x382   :  { %v1722_v6 = vpop.f32.mrb[28].mxu1 }
 0x383   :  { %v1190_v7 = vpop.f32.mrb[29].mxu1 }
 0x384   :  { %1309 = vxpose.xlu1.b32.cont [7/16] (narrow) %v2112_v26, 8  ;;  %1278 = vxpose.xlu0.b32.cont [8/16] (narrow) %v1674_v59, 8 }
 0x388   :  { %1310 = vxpose.xlu1.b32.cont [8/16] (narrow) %v2110_v25, 8  ;;  %1279 = vxpose.xlu0.b32.cont [9/16] (narrow) %v1040_v0, 8 }
 0x38a   :  { %v1725_v8 = vpop.f32.mrb[30].mxu1 }
 0x38b   :  { %v1200_v9 = vpop.f32.mrb[31].mxu1 }
 0x38c   :  { %1311 = vxpose.xlu1.b32.cont [9/16] (narrow) %v2116_v30, 8  ;;  %1280 = vxpose.xlu0.b32.cont [10/16] (narrow) %v1677_v63, 8 }
 0x390   :  { %1312 = vxpose.xlu1.b32.cont [10/16] (narrow) %v2114_v28, 8  ;;  %1281 = vxpose.xlu0.b32.cont [11/16] (narrow) %v1050_v4, 8 }
 0x392   :  { %v1728_v10 = vpop.f32.mrb[32].mxu1 }
 0x393   :  { %v1210_v11 = vpop.f32.mrb[33].mxu1 }
 0x394   :  { %1313 = vxpose.xlu1.b32.cont [11/16] (narrow) %v2120_v34, 8  ;;  %1282 = vxpose.xlu0.b32.cont [12/16] (narrow) %v1680_v1, 8 }
 0x398   :  { %1314 = vxpose.xlu1.b32.cont [12/16] (narrow) %v2118_v32, 8  ;;  %1283 = vxpose.xlu0.b32.cont [13/16] (narrow) %v2098_v15, 8  ;;  %v1868_v15 = vmov 0  }
 0x39a   :  { %v1731_v18 = vpop.f32.mrb[34].mxu1 }
 0x39b   :  { %v1220_v19 = vpop.f32.mrb[35].mxu1 }
 0x39c   :  { %1315 = vxpose.xlu1.b32.cont [13/16] (narrow) %v2124_v38, 8  ;;  %1284 = vxpose.xlu0.b32.cont [14/16] (narrow) %v2096_v14, 8  ;;  %v87_v14 = vld [vmem:[%s2176_s5] sm:$0x3]  ;;  %s1869_s5 = smov [#allocation8]  }
 0x39d   :  { %s1429_s16 = sshll.u32 %s1869_s5, 4  ;;  %s1430_s16 = int_to_ptr.vmem [resolvable:$true] %s1429_s16 }
 0x39e   :  { %s1831_s17 = scalar_lea.vmem %s1430_s16, 128  ;;  %p1836_p11 = scmp.lt.s32.totalorder %s1430_s16, %s1430_s16 }
 0x39f   :  { %p1832_p10 = scmp.ne.s32.totalorder %s1430_s16, %s1831_s17  ;;  %p1837_p12 = scmp.lt.s32.totalorder %s1831_s17, %s1831_s17 }
 0x3a0   :  { %1316 = vxpose.xlu1.b32.cont [14/16] (narrow) %v2122_v36, 8  ;;  %1285 = vxpose.xlu0.b32.cont [15/16] (narrow) %v2102_v17, 8 }
 0x3a1   :  { %p1838_p13 = por %p1837_p12, %p1836_p11 }
 0x3a2   :  { %v1734_v20 = vpop.f32.mrb[36].mxu1 }
 0x3a3   :  { %v1230_v21 = vpop.f32.mrb[37].mxu1  ;;  %p1839_p0 = pnand %p1838_p13, %p1832_p10 }
 0x3a4   :  { %1317 = vxpose.xlu1.b32.cont [15/16] (narrow) %v2128_v42, 8  ;;  %1286 = vxpose.xlu0.b32.end [16/16] (narrow) %v2100_v16, 8  ;;  %v506_v16 = vrot.slane %v499_v13, %v2010_v23 }
 0x3a6   :  { %v507_v22 = vcombine.high %v506_v16, %v506_v16  ;;  %v1373_v25 = vrot.slane %v506_v16, %v2010_v23 }
 0x3a8   :  { %1318 = vxpose.xlu1.b32.end [16/16] (narrow) %v2126_v40, 8  ;;  %v1381_v26 = vrot.slane %v507_v22, %v2010_v23  ;;  %v1374_v29 = vcombine.high %v1373_v25, %v1373_v25 }
 0x3aa   :  { %v1382_v30 = vcombine.high %v1381_v26, %v1381_v26 }
 0x3ac   :  { %1335 = vxpose.xlu1.b32.start [1/16] (narrow) %v1160_v56, 8  ;;  %v1255_v17 = vpop.trf.xlu1 }
 0x3ad   :  { %v1387_v31 = vadd.f32 %v1373_v25, %v1255_v17 }
 0x3b0   :  { %1336 = vxpose.xlu1.b32.cont [2/16] (narrow) %v1713_v54, 8 }
 0x3b4   :  { %1337 = vxpose.xlu1.b32.cont [3/16] (narrow) %v1170_v62, 8 }
 0x3b8   :  { %1338 = vxpose.xlu1.b32.cont [4/16] (narrow) %v1716_v60, 8 }
 0x3bc   :  { %1339 = vxpose.xlu1.b32.cont [5/16] (narrow) %v1180_v5, 8 }
 0x3c0   :  { %1340 = vxpose.xlu1.b32.cont [6/16] (narrow) %v1719_v2, 8 }
 0x3c4   :  { %1341 = vxpose.xlu1.b32.cont [7/16] (narrow) %v1190_v7, 8 }
 0x3c8   :  { %1342 = vxpose.xlu1.b32.cont [8/16] (narrow) %v1722_v6, 8 }
 0x3cc   :  { %1343 = vxpose.xlu1.b32.cont [9/16] (narrow) %v1200_v9, 8 }
 0x3cd   :  { %1764 = vset.pattern.permute.xlu0 %v1868_v15 }
 0x3ce   :  { %1393 = vperm.xlu0 %1764, %v87_v14  }
 0x3d0   :  { %1344 = vxpose.xlu1.b32.cont [10/16] (narrow) %v1725_v8, 8 }
 0x3d4   :  { %1345 = vxpose.xlu1.b32.cont [11/16] (narrow) %v1210_v11, 8 }
 0x3d8   :  { %1346 = vxpose.xlu1.b32.cont [12/16] (narrow) %v1728_v10, 8 }
 0x3dc   :  { %1347 = vxpose.xlu1.b32.cont [13/16] (narrow) %v1220_v19, 8 }
 0x3e0   :  { %1348 = vxpose.xlu1.b32.cont [14/16] (narrow) %v1731_v18, 8 }
 0x3e4   :  { %1349 = vxpose.xlu1.b32.cont [15/16] (narrow) %v1230_v21, 8 }
 0x3e8   :  { %1350 = vxpose.xlu1.b32.end [16/16] (narrow) %v1734_v20, 8  ;;  %v1287_v27 = vpop.trf.xlu0 }
 0x3e9   :  { %v1388_v32 = vadd.f32 %v1374_v29, %v1287_v27 }
 0x3ec   :  { %v1319_v24 = vpop.trf.xlu1 }
 0x3ed   :  { %v1389_v33 = vadd.f32 %v1381_v26, %v1319_v24 }
 0x42c   :  { %v1351_v28 = vpop.trf.xlu1 }
 0x42d   :  { %v1390_v34 = vadd.f32 %v1382_v30, %v1351_v28 }
 0x44d   :  { %v1394_v35 = vpop.permute.xlu0 %1393 }
 0x44e   :  { %v1396_v3 = vadd.f32 %v1394_v35, %v1387_v31  ;;  %v1397_v12 = vadd.f32 %v1394_v35, %v1388_v32  ;;  %v1398_v13 = vadd.f32 %v1394_v35, %v1389_v33  ;;  %v1399_v36 = vadd.f32 %v1394_v35, %v1390_v34 }
 0x450   :  { %v1404_v37 = vcombine.low %v1396_v3, %v1397_v12  ;;  %v1412_v38 = vcombine.low %v1398_v13, %v1399_v36 }
 0x452   :  { %1527 = vst.sshfl [vmem:[#allocation8] sm:$0x33 pattern:$0x76325410] %v1404_v37 }
 0x453   :  { %1528 = vst.sshfl [vmem:[#allocation8 + $0x4] sm:$0x33 pattern:$0x76325410] %v1412_v38 }
 0x454   :  { %1842 = shalt.err (!%p1839_p0)
}
 0x455   :  { %s1843_s20 = scalar_lea.hbm %s2177_s6, 128 }
 0x456   :  { %p1844_p1 = scmp.ne.s32.totalorder %s2177_s6, %s1843_s20  ;;  %p1847_p2 = scmp.lt.u32.totalorder %s1843_s20, %s2177_s6 }
 0x458   :  { %p1849_p3 = pnand %p1847_p2, %p1844_p1 }
 0x45a   :  { %1852 = shalt.err (!%p1849_p3)
}
 0x45b   :  { %1435 = dma.vmem_to_hbm [thread:$0]  %s1430_s16, 128, %s2177_s6, [#allocation4], %s1861_s9, %s1861_s9, %s1862_s10  }
 0x45c   :  { %1857 = dma.done.wait [#allocation4], 128  }
 0x45d   :  { %1858 = vsyncadd [#allocation4], 4294967168 }
 0x45e   :  { %1439 = vsyncpa [#allocation3], 1 }
 0x45f   :  { %1440 = vsyncpa [#allocation6], 1 }
 0x460   :  { %1441 = vsyncpa [#allocation4], 1 }

</bundles_post_ra>
